<compile_context>
chip_gen: v6e
topology: v6e:2x2x1
jax: 0.10.0
libtpu: 0.0.40
codegen_flags: <defaults>
</compile_context>

<pallas_src>
import functools
import math

import jax
import jax.numpy as jnp
from jax.experimental import pallas as pl
from jax.experimental.pallas import tpu as pltpu

BN_EPS = 1e-5
_SMALL_CIN = 4                       # <= this -> 1x1 conv on the VPU (skip MXU)
_BLOCK_VMEM_BUDGET = 16 * 1024 * 1024  # budget for double-buffered x + out blocks
_VMEM_LIMIT_CAP = 48 * 1024 * 1024     # keep under v7x's 64 MiB physical VMEM


def _round_up(x, m):
    return ((x + m - 1) // m) * m


def _conv1x1(w, x, c_in):
    """y[c, s] = sum_k w[c, k] * x[k, s].  w: (C_out, C_in), x: (C_in, TS)."""
    if c_in <= _SMALL_CIN:
        # Tiny contraction: unrolled broadcast multiply-adds on the VPU.
        y = w[:, 0:1] * x[0:1, :]
        for k in range(1, c_in):
            y = y + w[:, k:k + 1] * x[k:k + 1, :]
        return y.astype(jnp.float32)
    # TODO(synk): optional bf16 cast of x/w here for very large channel counts
    # on v5e (compute-bound there); kept f32 to preserve reference numerics.
    return jnp.dot(w, x, preferred_element_type=jnp.float32)


def _stats_kernel(x_ref, w_ref, sum_ref, sumsq_ref, *, c_in):
    """Pass 1: per-batch partial per-channel sum / sum-of-squares of conv out."""
    @pl.when(pl.program_id(1) == 0)
    def _():
        sum_ref[...] = jnp.zeros_like(sum_ref)
        sumsq_ref[...] = jnp.zeros_like(sumsq_ref)

    x = x_ref[...]                                   # (C_in, TS)
    y = _conv1x1(w_ref[...], x, c_in)                # (C_out, TS) f32
    sum_ref[...] += jnp.sum(y, axis=1, keepdims=True)         # (C_out, 1)
    sumsq_ref[...] += jnp.sum(y * y, axis=1, keepdims=True)   # (C_out, 1)


def _normalize_kernel(x_ref, w_ref, scale_ref, bias_ref, o_ref, *, c_in):
    """Pass 2: recompute conv, apply precomputed per-channel scale/bias, ReLU."""
    x = x_ref[...]                                   # (C_in, TS)
    y = _conv1x1(w_ref[...], x, c_in)                # (C_out, TS) f32
    o_ref[...] = jnp.maximum(y * scale_ref[...] + bias_ref[...], 0.0).astype(
        o_ref.dtype)


def _choose_spatial_tile(hw, c_in, c_out, budget=_BLOCK_VMEM_BUDGET):
    """Return (ts, hw_pad): ts a multiple of 128 sized from a VMEM budget,
    hw_pad the padded spatial extent (multiple of ts)."""
    hw128 = _round_up(hw, 128)
    bytes_per_col = 2 * (c_in + c_out) * 4           # double-buffered x + out, f32
    cap = budget // bytes_per_col
    cap = max(128, (cap // 128) * 128)
    if hw128 <= cap:
        return hw128, hw128                          # single tile per batch
    # Largest multiple-of-128 tile <= cap whose padding overhead is <= ~6%.
    max_total = hw128 + max(hw128 // 16, 128)
    for k in range(cap // 128, 0, -1):
        ts = k * 128
        total = _round_up(hw128, ts)
        if total <= max_total:
            return ts, total
    return 128, hw128                                # unreachable fallback


def skipconv_forward(x_nchw, weight):
    """x_nchw: (N, C_in, H, W) f32; weight: (C_out, C_in) f32. Returns NCHW f32."""
    n, c_in, h, w = x_nchw.shape
    c_out = weight.shape[0]
    hw = h * w
    m_true = n * hw

    ts, hw_pad = _choose_spatial_tile(hw, c_in, c_out)
    n_tiles = hw_pad // ts
    grid = (n, n_tiles)

    x3 = x_nchw.reshape(n, c_in, hw)                 # free reshape, NCHW-contiguous
    if hw_pad != hw:
        # conv(0) == 0 (no bias) -> padded columns add nothing to sum / sumsq.
        x3 = jnp.pad(x3, ((0, 0), (0, 0), (0, hw_pad - hw)))
    w2 = weight.astype(jnp.float32)                  # (C_out, C_in)

    x_spec = pl.BlockSpec((None, c_in, ts), lambda b, s: (b, 0, s))
    w_spec = pl.BlockSpec((c_out, c_in), lambda b, s: (0, 0))
    stat_out_spec = pl.BlockSpec((None, c_out, 1), lambda b, s: (b, 0, 0))
    vec_in_spec = pl.BlockSpec((c_out, 1), lambda b, s: (0, 0))
    out_spec = pl.BlockSpec((None, c_out, ts), lambda b, s: (b, 0, s))

    # Explicit scoped-VMEM limit: above the v5e/v6e defaults, below v7x physical.
    block_bytes = 2 * (c_in + c_out) * ts * 4 + c_out * c_in * 4 + 4 * c_out * 4
    vmem_limit = int(min(_VMEM_LIMIT_CAP, max(2 * block_bytes, 16 * 1024 * 1024)))

    m_pad = n * hw_pad
    conv_flops = 2 * m_pad * c_in * c_out
    x_bytes = m_pad * c_in * 4
    w_bytes = c_out * c_in * 4
    out_bytes = m_pad * c_out * 4

    # Pass 1: per-batch partial per-channel sum / sum-of-squares of conv output.
    part_sum, part_sumsq = pl.pallas_call(
        functools.partial(_stats_kernel, c_in=c_in),
        grid=grid,
        in_specs=[x_spec, w_spec],
        out_specs=[stat_out_spec, stat_out_spec],
        out_shape=[
            jax.ShapeDtypeStruct((n, c_out, 1), jnp.float32),
            jax.ShapeDtypeStruct((n, c_out, 1), jnp.float32),
        ],
        compiler_params=pltpu.CompilerParams(
            dimension_semantics=("parallel", "arbitrary"),
            vmem_limit_bytes=vmem_limit),
        cost_estimate=pl.CostEstimate(
            flops=conv_flops + 3 * m_pad * c_out,
            transcendentals=0,
            bytes_accessed=x_bytes + w_bytes + 2 * n * c_out * 4),
    )(x3, w2)

    # Fold batch partials, compute per-channel scale/bias once in plain JAX.
    inv_m = 1.0 / m_true
    ch_sum = jnp.sum(part_sum, axis=0)               # (C_out, 1)
    ch_sumsq = jnp.sum(part_sumsq, axis=0)           # (C_out, 1)
    mean = ch_sum * inv_m
    var = jnp.maximum(ch_sumsq * inv_m - mean * mean, 0.0)  # clamp cancellation
    rstd = jax.lax.rsqrt(var + BN_EPS)
    scale = rstd                                     # gamma = 1 (SkipConv init)
    bias = -mean * rstd                              # beta = 0

    # Pass 2: recompute the cheap conv, scale/shift, ReLU (fully parallel grid).
    out3 = pl.pallas_call(
        functools.partial(_normalize_kernel, c_in=c_in),
        grid=grid,
        in_specs=[x_spec, w_spec, vec_in_spec, vec_in_spec],
        out_specs=out_spec,
        out_shape=jax.ShapeDtypeStruct((n, c_out, hw_pad), jnp.float32),
        compiler_params=pltpu.CompilerParams(
            dimension_semantics=("parallel", "parallel"),
            vmem_limit_bytes=vmem_limit),
        cost_estimate=pl.CostEstimate(
            flops=conv_flops + 3 * m_pad * c_out,
            transcendentals=0,
            bytes_accessed=x_bytes + w_bytes + 2 * c_out * 4 + out_bytes),
    )(x3, w2, scale, bias)

    if hw_pad != hw:
        out3 = out3[:, :, :hw]
    return out3.reshape(n, c_out, h, w)


def init_params(key, in_channels, out_channels):
    """Conv weight ~ N(0, sqrt(2 / (k*k*out_channels))), k = 1.

    The conv bias is omitted: it cancels exactly under training-mode BatchNorm
    (per-channel mean subtraction), so it has no effect on the forward output.
    """
    std = math.sqrt(2.0 / (1 * 1 * out_channels))
    weight = std * jax.random.normal(key, (out_channels, in_channels), jnp.float32)
    return weight


def _reference(x_nchw, weight):
    """Pure-JAX reference: 1x1 conv -> BN (batch stats, gamma=1, beta=0) -> ReLU."""
    y = jnp.einsum("oc,nchw->nohw", weight, x_nchw)
    mean = jnp.mean(y, axis=(0, 2, 3), keepdims=True)
    var = jnp.mean((y - mean) ** 2, axis=(0, 2, 3), keepdims=True)  # biased
    return jnp.maximum((y - mean) * jax.lax.rsqrt(var + BN_EPS), 0.0)


# TODO(synk): BatchNorm2d running_mean / running_var buffer updates (and the
# unbiased-variance bookkeeping) are not emitted; only the forward activation is.

if __name__ == "__main__":
    key = jax.random.PRNGKey(0)
    k_x, k_w = jax.random.split(key)

    N, C_IN, C_OUT, H, W = 2, 4, 8, 16, 16
    x = jax.random.normal(k_x, (N, C_IN, H, W), jnp.float32)
    weight = init_params(k_w, C_IN, C_OUT)

    out = skipconv_forward(x, weight)
    jax.block_until_ready(out)

    assert out.shape == (N, C_OUT, H, W)
    ref = _reference(x, weight)
    assert jnp.allclose(out, ref, atol=2e-3, rtol=2e-3), "mismatch vs reference"
    print("KERNEL_OK")
</pallas_src>

<mosaic_0001>
module attributes {stable_mosaic.version = 11 : i64} {
  func.func @_stats_kernel(%arg0: i32, %arg1: i32, %arg2: memref<1x4x256xf32, #tpu.memory_space<vmem>>, %arg3: memref<8x4xf32, #tpu.memory_space<vmem>>, %arg4: memref<1x8x1xf32, #tpu.memory_space<vmem>>, %arg5: memref<1x8x1xf32, #tpu.memory_space<vmem>>) attributes {dimension_semantics = [#tpu.dimension_semantics<parallel>, #tpu.dimension_semantics<arbitrary>], iteration_bounds = array<i64: 2, 1>, scalar_prefetch = 0 : i64, scratch_operands = 0 : i64, tpu.core_type = #tpu.core_type<tc>, window_params = [{transform_indices = @transform_0, window_bounds = array<i64: 1, 4, 256>}, {pipeline_mode = #tpu.pipeline_mode<synchronous>, transform_indices = @transform_1, window_bounds = array<i64: 8, 4>}, {transform_indices = @transform_2, window_bounds = array<i64: 1, 8, 1>}, {transform_indices = @transform_3, window_bounds = array<i64: 1, 8, 1>}]} {
    %c0_i32 = arith.constant 0 : i32
    %0 = arith.cmpi eq, %arg1, %c0_i32 : i32
    %1 = arith.extui %0 : i1 to i32
    %c0_i32_0 = arith.constant 0 : i32
    %2 = arith.cmpi ne, %1, %c0_i32_0 : i32
    scf.if %2 {
      %cst_18 = arith.constant 0.000000e+00 : f32
      %46 = vector.broadcast %cst_18 : f32 to vector<8x1xf32>
      %c0_19 = arith.constant 0 : index
      %c0_20 = arith.constant 0 : index
      %c0_21 = arith.constant 0 : index
      %47 = vector.load %arg4[%c0_19, %c0_20, %c0_21] : memref<1x8x1xf32, #tpu.memory_space<vmem>>, vector<1x8x1xf32>
      %48 = vector.shape_cast %47 : vector<1x8x1xf32> to vector<8x1xf32>
      %49 = vector.shape_cast %46 : vector<8x1xf32> to vector<1x8x1xf32>
      tpu.vector_store %arg4[%c0_19, %c0_20, %c0_21], %49 {strides = array<i32>} : memref<1x8x1xf32, #tpu.memory_space<vmem>>, vector<1x8x1xf32>,
      %cst_22 = arith.constant 0.000000e+00 : f32
      %50 = vector.broadcast %cst_22 : f32 to vector<8x1xf32>
      %c0_23 = arith.constant 0 : index
      %c0_24 = arith.constant 0 : index
      %c0_25 = arith.constant 0 : index
      %51 = vector.load %arg5[%c0_23, %c0_24, %c0_25] : memref<1x8x1xf32, #tpu.memory_space<vmem>>, vector<1x8x1xf32>
      %52 = vector.shape_cast %51 : vector<1x8x1xf32> to vector<8x1xf32>
      %53 = vector.shape_cast %50 : vector<8x1xf32> to vector<1x8x1xf32>
      tpu.vector_store %arg5[%c0_23, %c0_24, %c0_25], %53 {strides = array<i32>} : memref<1x8x1xf32, #tpu.memory_space<vmem>>, vector<1x8x1xf32>,
    } else {
    }
    %c0 = arith.constant 0 : index
    %c0_1 = arith.constant 0 : index
    %c0_2 = arith.constant 0 : index
    %3 = vector.load %arg2[%c0, %c0_1, %c0_2] : memref<1x4x256xf32, #tpu.memory_space<vmem>>, vector<1x4x256xf32>
    %4 = vector.shape_cast %3 : vector<1x4x256xf32> to vector<4x256xf32>
    %c0_3 = arith.constant 0 : index
    %c0_4 = arith.constant 0 : index
    %5 = vector.load %arg3[%c0_3, %c0_4] : memref<8x4xf32, #tpu.memory_space<vmem>>, vector<8x4xf32>
    %6 = vector.extract_strided_slice %5 {offsets = [0, 0], sizes = [8, 1], strides = [1, 1]} : vector<8x4xf32> to vector<8x1xf32>
    %7 = vector.extract_strided_slice %4 {offsets = [0, 0], sizes = [1, 256], strides = [1, 1]} : vector<4x256xf32> to vector<1x256xf32>
    %8 = vector.broadcast %6 : vector<8x1xf32> to vector<8x256xf32>
    %9 = vector.broadcast %7 : vector<1x256xf32> to vector<8x256xf32>
    %10 = arith.mulf %8, %9 : vector<8x256xf32>
    %11 = vector.extract_strided_slice %5 {offsets = [0, 1], sizes = [8, 1], strides = [1, 1]} : vector<8x4xf32> to vector<8x1xf32>
    %12 = vector.extract_strided_slice %4 {offsets = [1, 0], sizes = [1, 256], strides = [1, 1]} : vector<4x256xf32> to vector<1x256xf32>
    %13 = vector.broadcast %11 : vector<8x1xf32> to vector<8x256xf32>
    %14 = vector.broadcast %12 : vector<1x256xf32> to vector<8x256xf32>
    %15 = arith.mulf %13, %14 : vector<8x256xf32>
    %16 = arith.addf %10, %15 : vector<8x256xf32>
    %17 = vector.extract_strided_slice %5 {offsets = [0, 2], sizes = [8, 1], strides = [1, 1]} : vector<8x4xf32> to vector<8x1xf32>
    %18 = vector.extract_strided_slice %4 {offsets = [2, 0], sizes = [1, 256], strides = [1, 1]} : vector<4x256xf32> to vector<1x256xf32>
    %19 = vector.broadcast %17 : vector<8x1xf32> to vector<8x256xf32>
    %20 = vector.broadcast %18 : vector<1x256xf32> to vector<8x256xf32>
    %21 = arith.mulf %19, %20 : vector<8x256xf32>
    %22 = arith.addf %16, %21 : vector<8x256xf32>
    %23 = vector.extract_strided_slice %5 {offsets = [0, 3], sizes = [8, 1], strides = [1, 1]} : vector<8x4xf32> to vector<8x1xf32>
    %24 = vector.extract_strided_slice %4 {offsets = [3, 0], sizes = [1, 256], strides = [1, 1]} : vector<4x256xf32> to vector<1x256xf32>
    %25 = vector.broadcast %23 : vector<8x1xf32> to vector<8x256xf32>
    %26 = vector.broadcast %24 : vector<1x256xf32> to vector<8x256xf32>
    %27 = arith.mulf %25, %26 : vector<8x256xf32>
    %28 = arith.addf %22, %27 : vector<8x256xf32>
    %c0_5 = arith.constant 0 : index
    %c0_6 = arith.constant 0 : index
    %c0_7 = arith.constant 0 : index
    %29 = vector.load %arg4[%c0_5, %c0_6, %c0_7] : memref<1x8x1xf32, #tpu.memory_space<vmem>>, vector<1x8x1xf32>
    %30 = vector.shape_cast %29 : vector<1x8x1xf32> to vector<8x1xf32>
    %cst = arith.constant dense<0.000000e+00> : vector<8xf32>
    %31 = vector.multi_reduction <add>, %28, %cst [1] : vector<8x256xf32> to vector<8xf32>
    %32 = vector.shape_cast %31 : vector<8xf32> to vector<8x1xf32>
    %33 = arith.addf %30, %32 : vector<8x1xf32>
    %c0_8 = arith.constant 0 : index
    %c0_9 = arith.constant 0 : index
    %c0_10 = arith.constant 0 : index
    %34 = vector.load %arg4[%c0_8, %c0_9, %c0_10] : memref<1x8x1xf32, #tpu.memory_space<vmem>>, vector<1x8x1xf32>
    %35 = vector.shape_cast %34 : vector<1x8x1xf32> to vector<8x1xf32>
    %36 = vector.shape_cast %33 : vector<8x1xf32> to vector<1x8x1xf32>
    tpu.vector_store %arg4[%c0_8, %c0_9, %c0_10], %36 {strides = array<i32>} : memref<1x8x1xf32, #tpu.memory_space<vmem>>, vector<1x8x1xf32>,
    %c0_11 = arith.constant 0 : index
    %c0_12 = arith.constant 0 : index
    %c0_13 = arith.constant 0 : index
    %37 = vector.load %arg5[%c0_11, %c0_12, %c0_13] : memref<1x8x1xf32, #tpu.memory_space<vmem>>, vector<1x8x1xf32>
    %38 = vector.shape_cast %37 : vector<1x8x1xf32> to vector<8x1xf32>
    %39 = arith.mulf %28, %28 : vector<8x256xf32>
    %cst_14 = arith.constant dense<0.000000e+00> : vector<8xf32>
    %40 = vector.multi_reduction <add>, %39, %cst_14 [1] : vector<8x256xf32> to vector<8xf32>
    %41 = vector.shape_cast %40 : vector<8xf32> to vector<8x1xf32>
    %42 = arith.addf %38, %41 : vector<8x1xf32>
    %c0_15 = arith.constant 0 : index
    %c0_16 = arith.constant 0 : index
    %c0_17 = arith.constant 0 : index
    %43 = vector.load %arg5[%c0_15, %c0_16, %c0_17] : memref<1x8x1xf32, #tpu.memory_space<vmem>>, vector<1x8x1xf32>
    %44 = vector.shape_cast %43 : vector<1x8x1xf32> to vector<8x1xf32>
    %45 = vector.shape_cast %42 : vector<8x1xf32> to vector<1x8x1xf32>
    tpu.vector_store %arg5[%c0_15, %c0_16, %c0_17], %45 {strides = array<i32>} : memref<1x8x1xf32, #tpu.memory_space<vmem>>, vector<1x8x1xf32>,
    return
  }
  func.func @transform_0(%arg0: i32, %arg1: i32) -> (i32, i32, i32) {
    %c0_i32 = arith.constant 0 : i32
    %c0_i32_0 = arith.constant 0 : i32
    return %arg0, %c0_i32, %arg1 : i32, i32, i32
  }
  func.func @transform_1(%arg0: i32, %arg1: i32) -> (i32, i32) {
    %c0_i32 = arith.constant 0 : i32
    %c0_i32_0 = arith.constant 0 : i32
    %c0_i32_1 = arith.constant 0 : i32
    return %c0_i32, %c0_i32_0 : i32, i32
  }
  func.func @transform_2(%arg0: i32, %arg1: i32) -> (i32, i32, i32) {
    %c0_i32 = arith.constant 0 : i32
    %c0_i32_0 = arith.constant 0 : i32
    %c0_i32_1 = arith.constant 0 : i32
    return %arg0, %c0_i32, %c0_i32_0 : i32, i32, i32
  }
  func.func @transform_3(%arg0: i32, %arg1: i32) -> (i32, i32, i32) {
    %c0_i32 = arith.constant 0 : i32
    %c0_i32_0 = arith.constant 0 : i32
    %c0_i32_1 = arith.constant 0 : i32
    return %arg0, %c0_i32, %c0_i32_0 : i32, i32, i32
  }
}

</mosaic_0001>

<bundles_post_ra>
// kernel: tpu_custom_call.1
= control target key start
LH: loop header
LB: loop body
LE: loop exit
PB: predicated region body
PF: predicated region fallthrough
CT: control target
= control target key end

     0   :  { %9 = vsyncpa [#allocation3], 0  ;;  %s760_s0 = inlined_call_operand.hbm [shape: f32[2,4,256], index: 0, kind: input, shape index: {}]   ;;  %s761_s1 = inlined_call_operand.vmem [shape: f32[8,4], index: 1, kind: input, shape index: {}]   ;;  %s762_s2 = inlined_call_operand.vmem [shape: f32[2,8,1], index: 2, kind: output, shape index: {0}]   ;;  %s763_s3 = inlined_call_operand.vmem [shape: f32[2,8,1], index: 3, kind: output, shape index: {1}]  }
   0x1   :  { %11 = vsyncpa [#allocation3 + $0x1], 0  ;;  %s635_s12 = smov 0   ;;  %s637_s13 = smov 0  }
   0x2   :  { %s639_s14 = smov 0   ;;  %s641_s15 = smov 0  }
   0x3   :  { %s643_s16 = smov 0   ;;  %s645_s17 = smov 0  }
   0x4 LB: > { %s450_s18 = sadd.s32 4294967295, %s607_s17   ;;  %s29_s19 = sadd.s32 1, %s603_s16  ;;  %s607_s17 = sphi %s645_s17, %s17_s17   ;;  %s603_s16 = sphi %s643_s16, %s771_s16   ;;  %s599_s15 = sphi %s641_s15, %s770_s15   ;;  %s595_s14 = sphi %s639_s14, %s769_s14   ;;  %s591_s13 = sphi %s637_s13, %s768_s13   ;;  %s587_s12 = sphi %s635_s12, %s767_s12  }
   0x5   : > { %p31_p0 = scmp.ge.s32.totalorder %s29_s19, 2  ;;  %s38_s20 = sadd.s32 1, %s595_s14 }
   0x6   : > { %p45_p1 = scmp.ne.s32.totalorder %s595_s14, %s591_s13  ;;  %p46_p2 = scmp.eq.s32.totalorder %s607_s17, 0 }
   0x7   : > { %s773_s19 = smov (%p31_p0, %s29_s19), 0  ;;  %p51_p4 = scmp.ne.s32.totalorder %s591_s13, %s587_s12 }
   0x8   : > { %p671_p3 = por %p46_p2, %p45_p1  ;;  %s33_s22 = ssub.s32 %s603_s16, %s773_s19 }
   0x9   : > { %p52_p5 = scmp.eq.s32.totalorder %s450_s18, 0  ;;  %p36_p6 = scmp.eq.s32.totalorder %s33_s22, 0 }
   0xa   : > { %p470_p8 = scmp.lt.s32.totalorder %s607_s17, 2  ;;  %s151_s25 = sand.u32 1, %s595_s14  }
   0xb   : > { %p678_p7 = por %p52_p5, %p51_p4  ;;  %s463_s26 = sshll.u32 %s603_s16, 7 }
   0xc   : > { %s684_s24 = scalar_select %p36_p6, %s595_s14, %s38_s20  }
   0xd   : > { %s454_s27 = sshll.u32 %s151_s25, 3  ;;  %s163_s30 = scalar_lea.hbm %s760_s0, %s463_s26 }
   0xe   : > { %s155_s4 = scalar_lea.vmem [#allocation2], %s454_s27  ;;  %p693_p9 = pnand %p470_p8, %p671_p3 }
   0xf   : > { %s165_s5 = sshll.u32 %s155_s4, 4  ;;  %p457_p10 = scmp.ge.s32.totalorder %s607_s17, 1  ;;  %s166_s5 = int_to_ptr.vmem [resolvable:$true] %s165_s5 }
  0x10   : > { %p170_p11 = scmp.lt.s32.totalorder %s607_s17, 3  ;;  %s152_s7 = scalar_lea.sflag [#allocation3], %s151_s25 }
  0x11   : > { %p531_p12 = pneg %p693_p9  ;;  %s542_s8 = scalar_lea.vmem %s166_s5, 128 }
  0x12   : > { %p543_p13 = scmp.ne.s32.totalorder %s166_s5, %s542_s8  ;;  %s609_s9 = smov [#allocation2]  }
  0x13   : > { %s547_s10 = sshll.u32 %s609_s9, 4  ;;  %s548_s10 = int_to_ptr.vmem [resolvable:$false] %s547_s10 }
  0x14   : > { %p545_p0 = pnand %p543_p13, %p531_p12  ;;  %s549_s11 = scalar_lea.vmem %s548_s10, 256 }
  0x15   : > { %p550_p2 = scmp.lt.s32.totalorder %s166_s5, %s548_s10  ;;  %p551_p3 = scmp.lt.s32.totalorder %s549_s11, %s542_s8 }
  0x16   : > { %p546_p1 = pneg %p545_p0 }
  0x17   : > { %p552_p4 = por %p551_p3, %p550_p2 }
  0x19   : > { %p553_p5 = pnand %p552_p4, %p546_p1 }
  0x1b   : > { %556 = shalt.err (!%p553_p5)
}
  0x1c   : > { %469 = dma.hbm_to_vmem [thread:$0]  (!%p693_p9), %s163_s30, 128, %s166_s5, %s152_s7  }
  0x1d   : > { %p171_p6 = pnand %p457_p10, %p170_p11 }
  0x1e   : > { %s176_s12 = sand.u32 (!%p171_p6), 1, %s591_s13  }
  0x1f   : > { %174 = sbr.rel (%p171_p6) target bundleno = 321 (0x141), region = 28  ;;  %s708_s18 = sshll.u32 (!%p171_p6), %s176_s12, 3 }
  0x20   : > { %s177_s20 = scalar_lea.sflag (!%p171_p6), [#allocation3], %s176_s12  ;;  %s180_s21 = scalar_lea.vmem (!%p171_p6), [#allocation2], %s708_s18 }
  0x24   : > { %582 = dma.done.wait (%p678_p7), %s177_s20, 128  }
  0x25   : > { %584 = vsyncadd (%p678_p7), %s177_s20, 4294967168  ;;  %v610_v0 = vmov 0   ;;  %v611_v1 = vmov 2   ;;  %v223_v2 = vld [vmem:[%s761_s1] sm:$0xff]  ;;  %v612_v3 = vmov 1   ;;  %v613_v4 = vmov 3  }
  0x26   : > { %524 = vset.pattern.permute.xlu0 %v610_v0  ;;  %526 = vset.pattern.permute.xlu1 %v611_v1  ;;  %p207_p7 = scmp.lt.s32.totalorder %s599_s15, 1  ;;  %vm219_vm0 = vcmask 7168   ;;  %v614_v5 = vmov 0.0   ;;  %v230_v6 = vlaneseq  ;;  %v222_v12 = vld [vmem:[%s180_s21] sm:$0xff] }
  0x27   : > { %226 = vperm.xlu0 %524, %v223_v2   ;;  %277 = vperm.xlu1 %526, %v223_v2  }
  0x28   : > { %s775_s15 = smov (!%p207_p7, %s599_s15), 1  ;;  %v231_v7 = vshrl.u32 %v230_v6, 7 }
  0x29   : > { %s459_s23 = sshll.u32 %s775_s15, 3 }
  0x2a   : > { %s728_s28 = scalar_lea.vmem %s762_s2, %s459_s23  ;;  %v232_v8 = vsub.s32 0, %v231_v7  ;;  %v236_v9 = vsub.s32 4, %v231_v7  ;;  %v256_v10 = vsub.s32 1, %v231_v7  ;;  %v260_v11 = vsub.s32 5, %v231_v7  ;;  %s214_s4 = scalar_lea.vmem %s763_s3, %s459_s23 }
  0x2b   : > { %525 = vset.pattern.permute.xlu0 %v612_v3  ;;  %527 = vset.pattern.permute.xlu1 %v613_v4  ;;  %220 = vst.msk [vmem:[%s728_s28] sm:$0xff] %vm219_vm0, %v614_v5  ;;  %v282_v13 = vsub.s32 2, %v231_v7  ;;  %v286_v14 = vsub.s32 6, %v231_v7  ;;  %v308_v15 = vsub.s32 3, %v231_v7  ;;  %v312_v16 = vsub.s32 7, %v231_v7  ;;  %221 = vst.msk [vmem:[%s214_s4] sm:$0xff] %vm219_vm0, %v614_v5 }
  0x2c   : > { %251 = vperm.xlu0 %525, %v223_v2   ;;  %303 = vperm.xlu1 %527, %v223_v2   ;;  %v233_v17 = vrot.slane %v222_v12, %v232_v8  ;;  %v237_v18 = vrot.slane %v222_v12, %v236_v9  ;;  %v257_v19 = vrot.slane %v222_v12, %v256_v10 }
  0x2d   : > { %v261_v20 = vrot.slane %v222_v12, %v260_v11  ;;  %v283_v21 = vrot.slane %v222_v12, %v282_v13  ;;  %v287_v22 = vrot.slane %v222_v12, %v286_v14  ;;  %v309_v25 = vrot.slane %v222_v12, %v308_v15 }
  0x2e   : > { %v313_v26 = vrot.slane %v222_v12, %v312_v16  ;;  %v243_v27 = vrot.slane %v233_v17, %v232_v8  ;;  %v247_v28 = vrot.slane %v237_v18, %v232_v8  ;;  %v267_v29 = vrot.slane %v257_v19, %v256_v10 }
  0x2f   : > { %v271_v30 = vrot.slane %v261_v20, %v256_v10  ;;  %v293_v31 = vrot.slane %v283_v21, %v282_v13  ;;  %v297_v32 = vrot.slane %v287_v22, %v282_v13  ;;  %v319_v33 = vrot.slane %v309_v25, %v308_v15 }
  0x30   : > { %528 = vset.pattern.permute.xlu0 %v613_v4  ;;  %v323_v34 = vrot.slane %v313_v26, %v308_v15 }
  0x32   : > { %v328_v55 = vld [vmem:[%s728_s28] sm:$0xff] }
  0x33   : > { %v335_v57 = vld [vmem:[%s214_s4] sm:$0xff] }
  0xa2   : > { %v227_v23 = vpop.permute.xlu0 %226  ;;  %v278_v24 = vpop.permute.xlu1 %277 }
  0xa3   : > { %v248_v37 = vmul.f32 %v243_v27, %v227_v23  ;;  %v249_v38 = vmul.f32 %v247_v28, %v227_v23  ;;  %v298_v41 = vmul.f32 %v293_v31, %v278_v24  ;;  %v299_v42 = vmul.f32 %v297_v32, %v278_v24 }
  0xa7   : > { %v252_v35 = vpop.permute.xlu0 %251  ;;  %v304_v36 = vpop.permute.xlu1 %303 }
  0xa8   : > { %v272_v39 = vmul.f32 %v267_v29, %v252_v35  ;;  %v273_v40 = vmul.f32 %v271_v30, %v252_v35  ;;  %v324_v45 = vmul.f32 %v319_v33, %v304_v36  ;;  %v325_v46 = vmul.f32 %v323_v34, %v304_v36 }
  0xaa   : > { %v274_v43 = vadd.f32 %v272_v39, %v248_v37  ;;  %v275_v44 = vadd.f32 %v273_v40, %v249_v38 }
  0xac   : > { %v300_v47 = vadd.f32 %v298_v41, %v274_v43  ;;  %v301_v48 = vadd.f32 %v299_v42, %v275_v44 }
  0xae   : > { %v326_v49 = vadd.f32 %v324_v45, %v300_v47  ;;  %v327_v50 = vadd.f32 %v325_v46, %v301_v48 }
  0xb0   : > { %v329_v51 = vadd.f32 %v327_v50, %v326_v49  ;;  %v336_v52 = vmul.f32 %v326_v49, %v326_v49  ;;  %v337_v53 = vmul.f32 %v327_v50, %v327_v50 }
  0xb2   : > { %330 = vadd.xlane.f32.xlu1 %v329_v51  ;;  %v338_v54 = vadd.f32 %v337_v53, %v336_v52 }
  0xb4   : > { %339 = vadd.xlane.f32.xlu0 %v338_v54 }
 0x13b   : > { %v331_v56 = vpop.xlane.xlu1 %330 }
 0x13c   : > { %v332_v58 = vadd.f32 %v331_v56, %v328_v55 }
 0x13d   : > { %v340_v59 = vpop.xlane.xlu0 %339 }
 0x13e   : > { %334 = vst.msk [vmem:[%s728_s28] sm:$0xff] %vm219_vm0, %v332_v58  ;;  %v341_v60 = vadd.f32 %v340_v59, %v335_v57 }
 0x140   : > { %342 = vst.msk [vmem:[%s214_s4] sm:$0xff] %vm219_vm0, %v341_v60 }
 0x141 PF: > { %s17_s17 = sadd.s32 1, %s607_s17   ;;  %s767_s12 = smov %s591_s13 }
 0x142   : > { %p14_p8 = scmp.ge.s32.totalorder %s17_s17, 4   ;;  %s768_s13 = smov %s595_s14 }
 0x143   : > { %s769_s14 = smov %s684_s24  ;;  %s770_s15 = smov %s603_s16 }
 0x144   : > { %s771_s16 = smov %s773_s19  ;;  %16 = sbr.rel (!%p14_p8) target bundleno = 4 (0x4), region = 84 }
 0x149   :  { %376 = vsyncpa [#allocation3], 1 }
 0x14a   :  { %378 = vsyncpa [#allocation3 + $0x1], 1 }

</bundles_post_ra>
